<compile_context>
chip_gen: v7x
topology: tpu7x:2x2x1
jax: 0.10.0
libtpu: 0.0.40
codegen_flags: <defaults>
</compile_context>

<pallas_src>
import jax
import jax.numpy as jnp
from jax.experimental import pallas as pl
from jax.experimental.pallas import tpu as pltpu

_LANE = 128


def _confusion_kernel(yp_ref, yt_ref, acc_ref):
    """acc_ref: (1, 3, 8, 128) f32 output block, resident across the reduction
    (second) grid axis.  Slot 0 accumulates sum(p), slot 1 sum(t), slot 2 sum(p*t)."""

    @pl.when(pl.program_id(1) == 0)
    def _init():
        acc_ref[...] = jnp.zeros_like(acc_ref)

    # Cast after load (inputs may be bf16); clamp matches torch.clamp(y_pred, 0, 1).
    yp = jnp.clip(yp_ref[...].astype(jnp.float32), 0.0, 1.0)
    yt = yt_ref[...].astype(jnp.float32)

    r = yp.shape[0] // 8
    yp3 = yp.reshape(r, 8, _LANE)
    yt3 = yt.reshape(r, 8, _LANE)

    # Reductions over the leading (vreg-major) axis only: pure VPU adds, no XLU.
    acc_ref[0, 0] += jnp.sum(yp3, axis=0)          # sum(p)
    acc_ref[0, 1] += jnp.sum(yt3, axis=0)          # sum(t)
    acc_ref[0, 2] += jnp.sum(yp3 * yt3, axis=0)    # sum(p * t)


def confusion_matrix(y_pred, y_true, *, max_tile_rows=2048, num_splits=2):
    """Pallas implementation of ConfusionMatrix.forward."""
    assert y_pred.size == y_true.size
    n = int(y_pred.size)

    def _prep(x):
        x = x.reshape(-1)
        if not jnp.issubdtype(x.dtype, jnp.floating):
            x = x.astype(jnp.float32)
        return x

    yp = _prep(y_pred)
    yt = _prep(y_true)

    rows = -(-n // _LANE)
    # Sublane-aligned tile height (multiple of 16 covers bf16 packing too).
    tile_rows = min(max_tile_rows, ((rows + 15) // 16) * 16)
    steps = -(-rows // tile_rows)
    if steps < num_splits:
        num_splits = 1
    steps_per_split = -(-steps // num_splits)
    rows_p = num_splits * steps_per_split * tile_rows
    pad = rows_p * _LANE - n

    if pad:
        # TODO(synk): mask only the tail tile in-kernel (scalar-prefetched n)
        # instead of this wrapper-side copy.  Padded zeros contribute 0 to all
        # three accumulated sums, so no correction is needed either way.
        yp = jnp.pad(yp, (0, pad))
        yt = jnp.pad(yt, (0, pad))

    yp2 = yp.reshape(rows_p, _LANE)
    yt2 = yt.reshape(rows_p, _LANE)

    grid = (num_splits, steps_per_split)

    def _in_map(c, i):
        return (c * steps_per_split + i, 0)

    partials = pl.pallas_call(
        _confusion_kernel,
        out_shape=jax.ShapeDtypeStruct((num_splits, 3, 8, _LANE), jnp.float32),
        grid_spec=pltpu.PrefetchScalarGridSpec(
            num_scalar_prefetch=0,
            grid=grid,
            in_specs=[
                pl.BlockSpec((tile_rows, _LANE), _in_map),
                pl.BlockSpec((tile_rows, _LANE), _in_map),
            ],
            out_specs=pl.BlockSpec((1, 3, 8, _LANE), lambda c, i: (c, 0, 0, 0)),
        ),
        compiler_params=pltpu.CompilerParams(
            dimension_semantics=("parallel", "arbitrary"),
        ),
    )(yp2, yt2)

    # Tiny final cross-lane/core reduce done by XLA (num_splits * 3 * 8 * 128 f32).
    sums = jnp.sum(partials, axis=(0, 2, 3))
    sp, st, spt = sums[0], sums[1], sums[2]

    tp = spt
    fp = sp - spt
    fn = st - spt
    tn = jnp.float32(n) - sp - st + spt   # padded zeros never enter any sum

    mat = jnp.stack([jnp.stack([tp, fp]), jnp.stack([fn, tn])])
    # torch.long is int64; without global x64 JAX's widest int is int32.
    count_dtype = jnp.int64 if jax.config.jax_enable_x64 else jnp.int32
    return mat.astype(count_dtype)


def _reference(y_pred, y_true, count_dtype):
    p = jnp.clip(y_pred.reshape(-1).astype(jnp.float32), 0.0, 1.0)
    t = y_true.reshape(-1).astype(jnp.float32)
    tp = jnp.sum(p * t)
    fp = jnp.sum(p * (1.0 - t))
    fn = jnp.sum((1.0 - p) * t)
    tn = jnp.sum((1.0 - p) * (1.0 - t))
    return jnp.array([[tp, fp], [fn, tn]]).astype(count_dtype)


if __name__ == "__main__":
    key = jax.random.PRNGKey(0)
    k1, k2 = jax.random.split(key)

    # Small segmentation-style prediction maps (NCHW).
    y_pred = jax.random.uniform(k1, (2, 4, 16, 16), jnp.float32,
                                minval=-0.5, maxval=1.5)  # exercises the clamp
    y_true = jax.random.bernoulli(k2, 0.4, (2, 4, 16, 16)).astype(jnp.float32)

    out = confusion_matrix(y_pred, y_true)
    out = jax.block_until_ready(out)

    ref = _reference(y_pred, y_true, out.dtype)
    assert out.shape == (2, 2)
    assert jnp.all(jnp.abs(out - ref) <= 1), (out, ref)

    print("KERNEL_OK")
</pallas_src>

<mosaic_0001>
module attributes {stable_mosaic.version = 11 : i64} {
  func.func @_confusion_kernel(%arg0: i32, %arg1: i32, %arg2: memref<16x128xf32, #tpu.memory_space<vmem>>, %arg3: memref<16x128xf32, #tpu.memory_space<vmem>>, %arg4: memref<1x3x8x128xf32, #tpu.memory_space<vmem>>) attributes {dimension_semantics = [#tpu.dimension_semantics<parallel>, #tpu.dimension_semantics<arbitrary>], iteration_bounds = array<i64: 1, 1>, scalar_prefetch = 0 : i64, scratch_operands = 0 : i64, tpu.core_type = #tpu.core_type<tc>, window_params = [{transform_indices = @transform_0, window_bounds = array<i64: 16, 128>}, {transform_indices = @transform_1, window_bounds = array<i64: 16, 128>}, {transform_indices = @transform_2, window_bounds = array<i64: 1, 3, 8, 128>}]} {
    %c0_i32 = arith.constant 0 : i32
    %0 = arith.cmpi eq, %arg1, %c0_i32 : i32
    %1 = arith.extui %0 : i1 to i32
    %c0_i32_0 = arith.constant 0 : i32
    %2 = arith.cmpi ne, %1, %c0_i32_0 : i32
    scf.if %2 {
      %cst_30 = arith.constant 0.000000e+00 : f32
      %33 = vector.broadcast %cst_30 : f32 to vector<1x3x8x128xf32>
      %c0_31 = arith.constant 0 : index
      %c0_32 = arith.constant 0 : index
      %c0_33 = arith.constant 0 : index
      %c0_34 = arith.constant 0 : index
      %34 = vector.load %arg4[%c0_31, %c0_32, %c0_33, %c0_34] : memref<1x3x8x128xf32, #tpu.memory_space<vmem>>, vector<1x3x8x128xf32>
      tpu.vector_store %arg4[%c0_31, %c0_32, %c0_33, %c0_34], %33 {strides = array<i32>} : memref<1x3x8x128xf32, #tpu.memory_space<vmem>>, vector<1x3x8x128xf32>,
    } else {
    }
    %c0 = arith.constant 0 : index
    %c0_1 = arith.constant 0 : index
    %3 = vector.load %arg2[%c0, %c0_1] : memref<16x128xf32, #tpu.memory_space<vmem>>, vector<16x128xf32>
    %cst = arith.constant 0.000000e+00 : f32
    %cst_2 = arith.constant 1.000000e+00 : f32
    %4 = vector.broadcast %cst : f32 to vector<16x128xf32>
    %5 = arith.maximumf %4, %3 : vector<16x128xf32>
    %6 = vector.broadcast %cst_2 : f32 to vector<16x128xf32>
    %7 = arith.minimumf %6, %5 : vector<16x128xf32>
    %c0_3 = arith.constant 0 : index
    %c0_4 = arith.constant 0 : index
    %8 = vector.load %arg3[%c0_3, %c0_4] : memref<16x128xf32, #tpu.memory_space<vmem>>, vector<16x128xf32>
    %9 = vector.shape_cast %7 : vector<16x128xf32> to vector<2x8x128xf32>
    %10 = vector.shape_cast %8 : vector<16x128xf32> to vector<2x8x128xf32>
    %c0_5 = arith.constant 0 : index
    %c0_6 = arith.constant 0 : index
    %c0_7 = arith.constant 0 : index
    %c0_8 = arith.constant 0 : index
    %11 = vector.load %arg4[%c0_5, %c0_6, %c0_7, %c0_8] : memref<1x3x8x128xf32, #tpu.memory_space<vmem>>, vector<1x1x8x128xf32>
    %12 = vector.shape_cast %11 : vector<1x1x8x128xf32> to vector<8x128xf32>
    %cst_9 = arith.constant dense<0.000000e+00> : vector<8x128xf32>
    %13 = vector.multi_reduction <add>, %9, %cst_9 [0] : vector<2x8x128xf32> to vector<8x128xf32>
    %14 = arith.addf %12, %13 : vector<8x128xf32>
    %c0_10 = arith.constant 0 : index
    %c0_11 = arith.constant 0 : index
    %c0_12 = arith.constant 0 : index
    %c0_13 = arith.constant 0 : index
    %15 = vector.load %arg4[%c0_10, %c0_11, %c0_12, %c0_13] : memref<1x3x8x128xf32, #tpu.memory_space<vmem>>, vector<1x1x8x128xf32>
    %16 = vector.shape_cast %15 : vector<1x1x8x128xf32> to vector<8x128xf32>
    %17 = vector.shape_cast %14 : vector<8x128xf32> to vector<1x1x8x128xf32>
    tpu.vector_store %arg4[%c0_10, %c0_11, %c0_12, %c0_13], %17 {strides = array<i32>} : memref<1x3x8x128xf32, #tpu.memory_space<vmem>>, vector<1x1x8x128xf32>,
    %c0_14 = arith.constant 0 : index
    %c1 = arith.constant 1 : index
    %c0_15 = arith.constant 0 : index
    %c0_16 = arith.constant 0 : index
    %18 = vector.load %arg4[%c0_14, %c1, %c0_15, %c0_16] : memref<1x3x8x128xf32, #tpu.memory_space<vmem>>, vector<1x1x8x128xf32>
    %19 = vector.shape_cast %18 : vector<1x1x8x128xf32> to vector<8x128xf32>
    %cst_17 = arith.constant dense<0.000000e+00> : vector<8x128xf32>
    %20 = vector.multi_reduction <add>, %10, %cst_17 [0] : vector<2x8x128xf32> to vector<8x128xf32>
    %21 = arith.addf %19, %20 : vector<8x128xf32>
    %c0_18 = arith.constant 0 : index
    %c1_19 = arith.constant 1 : index
    %c0_20 = arith.constant 0 : index
    %c0_21 = arith.constant 0 : index
    %22 = vector.load %arg4[%c0_18, %c1_19, %c0_20, %c0_21] : memref<1x3x8x128xf32, #tpu.memory_space<vmem>>, vector<1x1x8x128xf32>
    %23 = vector.shape_cast %22 : vector<1x1x8x128xf32> to vector<8x128xf32>
    %24 = vector.shape_cast %21 : vector<8x128xf32> to vector<1x1x8x128xf32>
    tpu.vector_store %arg4[%c0_18, %c1_19, %c0_20, %c0_21], %24 {strides = array<i32>} : memref<1x3x8x128xf32, #tpu.memory_space<vmem>>, vector<1x1x8x128xf32>,
    %c0_22 = arith.constant 0 : index
    %c2 = arith.constant 2 : index
    %c0_23 = arith.constant 0 : index
    %c0_24 = arith.constant 0 : index
    %25 = vector.load %arg4[%c0_22, %c2, %c0_23, %c0_24] : memref<1x3x8x128xf32, #tpu.memory_space<vmem>>, vector<1x1x8x128xf32>
    %26 = vector.shape_cast %25 : vector<1x1x8x128xf32> to vector<8x128xf32>
    %27 = arith.mulf %9, %10 : vector<2x8x128xf32>
    %cst_25 = arith.constant dense<0.000000e+00> : vector<8x128xf32>
    %28 = vector.multi_reduction <add>, %27, %cst_25 [0] : vector<2x8x128xf32> to vector<8x128xf32>
    %29 = arith.addf %26, %28 : vector<8x128xf32>
    %c0_26 = arith.constant 0 : index
    %c2_27 = arith.constant 2 : index
    %c0_28 = arith.constant 0 : index
    %c0_29 = arith.constant 0 : index
    %30 = vector.load %arg4[%c0_26, %c2_27, %c0_28, %c0_29] : memref<1x3x8x128xf32, #tpu.memory_space<vmem>>, vector<1x1x8x128xf32>
    %31 = vector.shape_cast %30 : vector<1x1x8x128xf32> to vector<8x128xf32>
    %32 = vector.shape_cast %29 : vector<8x128xf32> to vector<1x1x8x128xf32>
    tpu.vector_store %arg4[%c0_26, %c2_27, %c0_28, %c0_29], %32 {strides = array<i32>} : memref<1x3x8x128xf32, #tpu.memory_space<vmem>>, vector<1x1x8x128xf32>,
    return
  }
  func.func @transform_0(%arg0: i32, %arg1: i32) -> (i32, i32) {
    %c1_i32 = arith.constant 1 : i32
    %0 = arith.muli %arg0, %c1_i32 : i32
    %1 = arith.addi %0, %arg1 : i32
    %c0_i32 = arith.constant 0 : i32
    %c0_i32_0 = arith.constant 0 : i32
    return %1, %c0_i32 : i32, i32
  }
  func.func @transform_1(%arg0: i32, %arg1: i32) -> (i32, i32) {
    %c1_i32 = arith.constant 1 : i32
    %0 = arith.muli %arg0, %c1_i32 : i32
    %1 = arith.addi %0, %arg1 : i32
    %c0_i32 = arith.constant 0 : i32
    %c0_i32_0 = arith.constant 0 : i32
    return %1, %c0_i32 : i32, i32
  }
  func.func @transform_2(%arg0: i32, %arg1: i32) -> (i32, i32, i32, i32) {
    %c0_i32 = arith.constant 0 : i32
    %c0_i32_0 = arith.constant 0 : i32
    %c0_i32_1 = arith.constant 0 : i32
    %c0_i32_2 = arith.constant 0 : i32
    return %arg0, %c0_i32, %c0_i32_0, %c0_i32_1 : i32, i32, i32, i32
  }
}

</mosaic_0001>

<bundles_post_ra>
// kernel: tpu_custom_call.1
= control target key start
LH: loop header
LB: loop body
LE: loop exit
PB: predicated region body
PF: predicated region fallthrough
CT: control target
= control target key end

     0   :  { %7 = vsyncpa [#allocation3], 0  ;;  %s244_s0 = inlined_call_operand.hbm [shape: f32[16,128], index: 0, kind: input, shape index: {}]   ;;  %s245_s1 = inlined_call_operand.hbm [shape: f32[16,128], index: 1, kind: input, shape index: {}]   ;;  %s246_s2 = inlined_call_operand.hbm [shape: f32[1,3,8,128], index: 2, kind: output, shape index: {}]  }
   0x1   :  { %8 = vsyncpa [#allocation6], 0 }
   0x2   :  { %9 = vsyncpa [#allocation4], 0  ;;  %s179_s9 = smov [#allocation2]   ;;  %s107_s13 = scalar_lea.hbm %s244_s0, 256 }
   0x3   :  { %s19_s10 = sshll.u32 %s179_s9, 4  ;;  %p108_p0 = scmp.ne.s32.totalorder %s244_s0, %s107_s13  ;;  %s20_s10 = int_to_ptr.vmem [resolvable:$true] %s19_s10 }
   0x4   :  { %p111_p1 = scmp.lt.u32.totalorder %s107_s13, %s244_s0 }
   0x6   :  { %p113_p2 = pnand %p111_p1, %p108_p0 }
   0x8   :  { %116 = shalt.err (!%p113_p2)
}
   0x9   :  { %s117_s18 = scalar_lea.vmem %s20_s10, 256  ;;  %p122_p4 = scmp.lt.s32.totalorder %s20_s10, %s20_s10 }
   0xa   :  { %p118_p3 = scmp.ne.s32.totalorder %s20_s10, %s117_s18  ;;  %p123_p5 = scmp.lt.s32.totalorder %s117_s18, %s117_s18 }
   0xc   :  { %p124_p6 = por %p123_p5, %p122_p4 }
   0xe   :  { %p125_p7 = pnand %p124_p6, %p118_p3 }
  0x10   :  { %128 = shalt.err (!%p125_p7)
}
  0x11   :  { %s180_s19 = smov 128   ;;  %s181_s20 = smov 8  }
  0x12   :  { %25 = dma.hbm_to_vmem [thread:$0]  %s244_s0, 256, %s20_s10, [#allocation3], %s180_s19, %s180_s19, %s181_s20  }
  0x13   :  { %s182_s23 = smov [#allocation5]   ;;  %s129_s27 = scalar_lea.hbm %s245_s1, 256 }
  0x14   :  { %s35_s24 = sshll.u32 %s182_s23, 4  ;;  %p130_p8 = scmp.ne.s32.totalorder %s245_s1, %s129_s27  ;;  %s36_s24 = int_to_ptr.vmem [resolvable:$true] %s35_s24 }
  0x15   :  { %p133_p9 = scmp.lt.u32.totalorder %s129_s27, %s245_s1 }
  0x17   :  { %p135_p10 = pnand %p133_p9, %p130_p8 }
  0x19   :  { %138 = shalt.err (!%p135_p10)
}
  0x1a   :  { %s139_s4 = scalar_lea.vmem %s36_s24, 256  ;;  %p144_p12 = scmp.lt.s32.totalorder %s36_s24, %s36_s24 }
  0x1b   :  { %p140_p11 = scmp.ne.s32.totalorder %s36_s24, %s139_s4  ;;  %p145_p13 = scmp.lt.s32.totalorder %s139_s4, %s139_s4 }
  0x1d   :  { %p146_p0 = por %p145_p13, %p144_p12 }
  0x1f   :  { %p147_p1 = pnand %p146_p0, %p140_p11 }
  0x21   :  { %150 = shalt.err (!%p147_p1)
}
  0x22   :  { %41 = dma.hbm_to_vmem [thread:$0]  %s245_s1, 256, %s36_s24, [#allocation6], %s180_s19, %s180_s19, %s181_s20  }
  0x23   :  { %173 = dma.done.wait [#allocation3], 256  }
  0x24   :  { %174 = vsyncadd [#allocation3], 4294967040 }
  0x25   :  { %175 = dma.done.wait [#allocation6], 256  }
  0x26   :  { %176 = vsyncadd [#allocation6], 4294967040  ;;  %v59_v0 = vld [vmem:[#allocation2] sm:$0xff]  ;;  %v60_v1 = vld [vmem:[#allocation2 + $0x8] sm:$0xff]  ;;  %s183_s6 = smov [#allocation7]  }
  0x27   :  { %v61_v2 = vmax.f32 %v59_v0, 0.0  ;;  %v62_v3 = vmax.f32 %v60_v1, 0.0  ;;  %v65_v4 = vld [vmem:[#allocation5] sm:$0xff]  ;;  %v66_v5 = vld [vmem:[#allocation5 + $0x8] sm:$0xff]  ;;  %s88_s7 = sshll.u32 %s183_s6, 4  ;;  %s89_s7 = int_to_ptr.vmem [resolvable:$true] %s88_s7 }
  0x28   :  { %v73_v6 = vadd.f32 %v66_v5, %v65_v4  ;;  %s151_s1 = scalar_lea.vmem %s89_s7, 384  ;;  %p156_p3 = scmp.lt.s32.totalorder %s89_s7, %s89_s7 }
  0x29   :  { %v63_v7 = vmin.f32 %v61_v2, 1.0  ;;  %v64_v8 = vmin.f32 %v62_v3, 1.0  ;;  %p152_p2 = scmp.ne.s32.totalorder %s89_s7, %s151_s1  ;;  %p157_p4 = scmp.lt.s32.totalorder %s151_s1, %s151_s1 }
  0x2a   :  { %75 = vst [vmem:[#allocation7 + $0x8] sm:$0xff] %v73_v6 }
  0x2b   :  { %v68_v9 = vadd.f32 %v64_v8, %v63_v7  ;;  %v78_v10 = vmul.f32 %v65_v4, %v63_v7  ;;  %v79_v11 = vmul.f32 %v66_v5, %v64_v8  ;;  %p158_p5 = por %p157_p4, %p156_p3 }
  0x2d   :  { %v80_v12 = vadd.f32 %v79_v11, %v78_v10  ;;  %70 = vst [vmem:[#allocation7] sm:$0xff] %v68_v9  ;;  %p159_p6 = pnand %p158_p5, %p152_p2 }
  0x2f   :  { %82 = vst [vmem:[#allocation7 + $0x10] sm:$0xff] %v80_v12 }
  0x30   :  { %162 = shalt.err (!%p159_p6)
}
  0x31   :  { %s163_s10 = scalar_lea.hbm %s246_s2, 384 }
  0x32   :  { %p164_p7 = scmp.ne.s32.totalorder %s246_s2, %s163_s10  ;;  %p167_p8 = scmp.lt.u32.totalorder %s163_s10, %s246_s2 }
  0x34   :  { %p169_p9 = pnand %p167_p8, %p164_p7 }
  0x36   :  { %172 = shalt.err (!%p169_p9)
}
  0x37   :  { %94 = dma.vmem_to_hbm [thread:$0]  %s89_s7, 384, %s246_s2, [#allocation4], %s180_s19, %s180_s19, %s181_s20  }
  0x38   :  { %177 = dma.done.wait [#allocation4], 384  }
  0x39   :  { %178 = vsyncadd [#allocation4], 4294966912 }
  0x3a   :  { %98 = vsyncpa [#allocation3], 1 }
  0x3b   :  { %99 = vsyncpa [#allocation6], 1 }
  0x3c   :  { %100 = vsyncpa [#allocation4], 1 }

</bundles_post_ra>
